<compile_context>
chip_gen: v7x
topology: tpu7x:2x2x1
jax: 0.10.0
libtpu: 0.0.40
codegen_flags: <defaults>
</compile_context>

<pallas_src>
import jax
import jax.numpy as jnp
from jax.experimental import pallas as pl
from jax.experimental.pallas import tpu as pltpu


def _round_up(x, m):
    return ((x + m - 1) // m) * m


def _cdiv(a, b):
    return -(-a // b)


# ---------------------------------------------------------------------------
# Kernel 1: cotangent weights per face (pure VPU/EUP, faces packed (rows,128))
# ---------------------------------------------------------------------------
_FACE_ROWS_TILE = 256  # 256 sublane-rows x 128 lanes = 32768 faces per grid step


def _cot_kernel(vg_ref, c_ref):
    # vg_ref: (3 corners, 3 xyz, R, 128); c_ref: (3 edges, R, 128)
    v1x = vg_ref[0, 0]; v1y = vg_ref[0, 1]; v1z = vg_ref[0, 2]
    v2x = vg_ref[1, 0]; v2y = vg_ref[1, 1]; v2z = vg_ref[1, 2]
    v3x = vg_ref[2, 0]; v3y = vg_ref[2, 1]; v3z = vg_ref[2, 2]

    d1x = v2x - v3x; d1y = v2y - v3y; d1z = v2z - v3z
    d2x = v3x - v1x; d2y = v3y - v1y; d2z = v3z - v1z
    d3x = v1x - v2x; d3y = v1y - v2y; d3z = v1z - v2z

    # explicit per-component sums: stays in the VPU, no cross-sublane XLU work
    l1sq = d1x * d1x + d1y * d1y + d1z * d1z   # (R, 128)
    l2sq = d2x * d2x + d2y * d2y + d2z * d2z
    l3sq = d3x * d3x + d3y * d3y + d3z * d3z

    # 16*Area^2 from squared edge lengths (no per-edge sqrt needed):
    # 16 A^2 = 2(a2 b2 + b2 c2 + c2 a2) - (a2^2 + b2^2 + c2^2)
    sixteen_a2 = (2.0 * (l1sq * l2sq + l2sq * l3sq + l3sq * l1sq)
                  - (l1sq * l1sq + l2sq * l2sq + l3sq * l3sq))
    sixteen_a2 = jnp.maximum(sixteen_a2, 0.0)     # masked_fill_(inside < 0, 0)
    A = 0.5 * jnp.sqrt(sixteen_a2)                # == 2 * sqrt(Heron)

    # one (exact) reciprocal instead of three divisions
    inv = pl.reciprocal((A + 1e-10) * 4.0, approx=False)
    zero = jnp.zeros_like(A)
    deg = A == 0.0                                # masked_fill_(A == 0, 0)

    # three direct lane-dense plane stores (no cross-sublane concatenate)
    c_ref[0] = jnp.where(deg, zero, (l2sq + l3sq - l1sq) * inv)
    c_ref[1] = jnp.where(deg, zero, (l1sq + l3sq - l2sq) * inv)
    c_ref[2] = jnp.where(deg, zero, (l1sq + l2sq - l3sq) * inv)


def _choose_face_rows(M):
    rows_needed = max(_cdiv(M, 128), 1)
    if rows_needed <= 8:
        rows_tile = 8
    elif rows_needed <= 2 * _FACE_ROWS_TILE:
        # aim for >=2 grid steps so v7x's second TensorCore gets work
        rows_tile = _round_up(_cdiv(rows_needed, 2), 8)
    else:
        rows_tile = _FACE_ROWS_TILE
    rows_total = _round_up(rows_needed, rows_tile)
    return rows_tile, rows_total


def cotangent(V, F):
    """V: (B,N,3) f32, F: (B,T,3) int32 -> C: (B,T,3), columns (cot23, cot31, cot12)."""
    B, N, _ = V.shape
    T = F.shape[1]
    M = B * T

    # Gather triangle corner vertices (glue).
    bidx = jnp.arange(B)[:, None]
    v1 = V[bidx, F[:, :, 0], :]  # (B, T, 3)
    v2 = V[bidx, F[:, :, 1], :]
    v3 = V[bidx, F[:, :, 2], :]

    # (3 corners, 3 xyz, M faces); then pack faces over (rows, 128 lanes).
    vg = jnp.stack([v1, v2, v3], axis=0).reshape(3, M, 3).transpose(0, 2, 1)
    vg = vg.astype(jnp.float32)

    rows_tile, rows_total = _choose_face_rows(M)
    M_pad = rows_total * 128
    if M_pad != M:
        # pad with zero-faces (A==0 -> weights 0, then dropped)
        vg = jnp.pad(vg, ((0, 0), (0, 0), (0, M_pad - M)))
    vg = vg.reshape(3, 3, rows_total, 128)

    C_t = pl.pallas_call(
        _cot_kernel,
        out_shape=jax.ShapeDtypeStruct((3, rows_total, 128), jnp.float32),
        grid=(rows_total // rows_tile,),
        in_specs=[pl.BlockSpec((3, 3, rows_tile, 128), lambda m: (0, 0, m, 0))],
        out_specs=pl.BlockSpec((3, rows_tile, 128), lambda m: (0, m, 0)),
        compiler_params=pltpu.CompilerParams(dimension_semantics=("parallel",)),
    )(vg)

    return C_t.reshape(3, M_pad)[:, :M].T.reshape(B, T, 3)


# ---------------------------------------------------------------------------
# Kernel 2: apply Laplacian.  Row-tiled and K-tiled over the contraction axis
# with a VMEM accumulator; row-sum folded into the MXU pass via a 128-lane
# padded V whose lane 3 is all-ones; the output store is lane-dense.
# ---------------------------------------------------------------------------
def _laplacian_apply_kernel(w_ref, vk_ref, vtile_ref, o_ref, acc_ref):
    k = pl.program_id(2)

    @pl.when(k == 0)
    def _():
        acc_ref[...] = jnp.zeros_like(acc_ref)

    # (tm, tk) @ (tk, 128): lanes 0..2 accumulate W@V, lane 3 accumulates rowsum(W)
    acc_ref[...] += jnp.dot(w_ref[0], vk_ref[0], preferred_element_type=jnp.float32)

    @pl.when(k == pl.num_programs(2) - 1)
    def _():
        out = acc_ref[...]
        # (W - diag(rowsum)) @ V in lanes 0..2; lane 3 and 4..127 become exactly 0.
        o_ref[0] = out - out[:, 3:4] * vtile_ref[0]


def _choose_tiles(N):
    """Returns (N_pad, tm_row, tk).  VMEM per step stays a few MiB for any N."""
    if N <= 512:
        np_ = _round_up(max(N, 8), 8)
        return np_, np_, np_
    tm = 256
    tk = 1024 if N >= 1024 else 512
    return _round_up(N, tk), tm, tk   # tk is a multiple of tm -> both divide N_pad


def cot_laplacian_forward(V, F):
    """Forward of CotLaplacian: returns Lx with shape (B, N, 3), float32."""
    B, N, _ = V.shape
    V = V.astype(jnp.float32)

    C = cotangent(V, F)  # (B, T, 3)

    # Sparse Laplacian assembly: rows = F[:, [1,2,0]], cols = F[:, [2,0,1]].
    rows = F[:, :, jnp.array([1, 2, 0])]                   # (B, T, 3)
    cols = F[:, :, jnp.array([2, 0, 1])]                   # (B, T, 3)
    bidx = jnp.broadcast_to(jnp.arange(B)[:, None, None], rows.shape)

    N_pad, tm_row, tk = _choose_tiles(N)

    # TODO(synk): sparse CSR assembly (scatter-add) has no clean Pallas/TPU
    # equivalent; the per-batch dense symmetric weight matrix is built with JAX
    # scatter-add glue (scattering (r,c) and (c,r) reproduces L + L.T exactly).
    # A per-edge segment-sum formulation (Lx_i = sum_j w_ij (V_j - V_i)) would
    # avoid the dense O(N^2) W entirely and is the dominant win for large N.
    W = jnp.zeros((B, N_pad, N_pad), jnp.float32)
    W = W.at[bidx, rows, cols].add(C)
    W = W.at[bidx, cols, rows].add(C)

    # 128-lane padded V: lanes 0..2 = xyz, lane 3 = 1 (row-sum column), rest 0.
    Vpad = jnp.zeros((B, N_pad, 128), jnp.float32)
    Vpad = Vpad.at[:, :N, :3].set(V)
    Vpad = Vpad.at[:, :, 3].set(1.0)

    Lx_pad = pl.pallas_call(
        _laplacian_apply_kernel,
        out_shape=jax.ShapeDtypeStruct((B, N_pad, 128), jnp.float32),
        grid=(B, N_pad // tm_row, N_pad // tk),
        in_specs=[
            pl.BlockSpec((1, tm_row, tk), lambda b, i, k: (b, i, k)),   # W tile
            pl.BlockSpec((1, tk, 128), lambda b, i, k: (b, k, 0)),      # V K-slice
            pl.BlockSpec((1, tm_row, 128), lambda b, i, k: (b, i, 0)),  # V row tile (diag term)
        ],
        out_specs=pl.BlockSpec((1, tm_row, 128), lambda b, i, k: (b, i, 0)),
        scratch_shapes=[pltpu.VMEM((tm_row, 128), jnp.float32)],
        compiler_params=pltpu.CompilerParams(
            dimension_semantics=("parallel", "parallel", "arbitrary"),
        ),
    )(W, Vpad, Vpad)

    return Lx_pad[:, :N, :3]


# ---------------------------------------------------------------------------
# Pure-JAX reference (mirrors the PyTorch/scipy code) for a correctness check.
# ---------------------------------------------------------------------------
def _reference(V, F):
    B, N, _ = V.shape
    bidx = jnp.arange(B)[:, None]
    v1 = V[bidx, F[:, :, 0], :]
    v2 = V[bidx, F[:, :, 1], :]
    v3 = V[bidx, F[:, :, 2], :]
    l1 = jnp.sqrt(((v2 - v3) ** 2).sum(2))
    l2 = jnp.sqrt(((v3 - v1) ** 2).sum(2))
    l3 = jnp.sqrt(((v1 - v2) ** 2).sum(2))
    sp = (l1 + l2 + l3) * 0.5
    inside = jnp.maximum(sp * (sp - l1) * (sp - l2) * (sp - l3), 0.0)
    A = 2.0 * jnp.sqrt(inside)
    C = jnp.stack([l2 ** 2 + l3 ** 2 - l1 ** 2,
                   l1 ** 2 + l3 ** 2 - l2 ** 2,
                   l1 ** 2 + l2 ** 2 - l3 ** 2], 2) / (A[..., None] + 1e-10) / 4.0
    C = jnp.where(A[..., None] == 0.0, 0.0, C)

    rows = F[:, :, jnp.array([1, 2, 0])]
    cols = F[:, :, jnp.array([2, 0, 1])]
    bidx3 = jnp.broadcast_to(jnp.arange(B)[:, None, None], rows.shape)
    W = jnp.zeros((B, N, N), jnp.float32)
    W = W.at[bidx3, rows, cols].add(C)
    W = W.at[bidx3, cols, rows].add(C)
    L = W - jnp.eye(N, dtype=jnp.float32)[None] * W.sum(axis=2, keepdims=True)
    return jnp.einsum("bij,bjk->bik", L, V)


if __name__ == "__main__":
    key = jax.random.PRNGKey(0)
    kv, kf = jax.random.split(key)

    B, N, T = 2, 16, 24                       # batch, vertices, faces
    V = jax.random.normal(kv, (B, N, 3), dtype=jnp.float32)
    F = jax.random.randint(kf, (B, T, 3), 0, N, dtype=jnp.int32)

    Lx = cot_laplacian_forward(V, F)
    Lx = jax.block_until_ready(Lx)

    assert Lx.shape == (B, N, 3), Lx.shape
    ref = _reference(V, F)
    max_err = float(jnp.max(jnp.abs(Lx - ref)))
    assert jnp.allclose(Lx, ref, atol=1e-4, rtol=1e-4), max_err

    print("KERNEL_OK")
</pallas_src>

<mosaic_0001>
module attributes {stable_mosaic.version = 11 : i64} {
  func.func @_cot_kernel(%arg0: i32, %arg1: memref<3x3x8x128xf32, #tpu.memory_space<vmem>>, %arg2: memref<3x8x128xf32, #tpu.memory_space<vmem>>) attributes {dimension_semantics = [#tpu.dimension_semantics<parallel>], iteration_bounds = array<i64: 1>, scalar_prefetch = 0 : i64, scratch_operands = 0 : i64, tpu.core_type = #tpu.core_type<tc>, window_params = [{transform_indices = @transform_0, window_bounds = array<i64: 3, 3, 8, 128>}, {transform_indices = @transform_1, window_bounds = array<i64: 3, 8, 128>}]} {
    %c0 = arith.constant 0 : index
    %c0_0 = arith.constant 0 : index
    %c0_1 = arith.constant 0 : index
    %c0_2 = arith.constant 0 : index
    %0 = vector.load %arg1[%c0, %c0_0, %c0_1, %c0_2] : memref<3x3x8x128xf32, #tpu.memory_space<vmem>>, vector<1x1x8x128xf32>
    %1 = vector.shape_cast %0 : vector<1x1x8x128xf32> to vector<8x128xf32>
    %c0_3 = arith.constant 0 : index
    %c1 = arith.constant 1 : index
    %c0_4 = arith.constant 0 : index
    %c0_5 = arith.constant 0 : index
    %2 = vector.load %arg1[%c0_3, %c1, %c0_4, %c0_5] : memref<3x3x8x128xf32, #tpu.memory_space<vmem>>, vector<1x1x8x128xf32>
    %3 = vector.shape_cast %2 : vector<1x1x8x128xf32> to vector<8x128xf32>
    %c0_6 = arith.constant 0 : index
    %c2 = arith.constant 2 : index
    %c0_7 = arith.constant 0 : index
    %c0_8 = arith.constant 0 : index
    %4 = vector.load %arg1[%c0_6, %c2, %c0_7, %c0_8] : memref<3x3x8x128xf32, #tpu.memory_space<vmem>>, vector<1x1x8x128xf32>
    %5 = vector.shape_cast %4 : vector<1x1x8x128xf32> to vector<8x128xf32>
    %c1_9 = arith.constant 1 : index
    %c0_10 = arith.constant 0 : index
    %c0_11 = arith.constant 0 : index
    %c0_12 = arith.constant 0 : index
    %6 = vector.load %arg1[%c1_9, %c0_10, %c0_11, %c0_12] : memref<3x3x8x128xf32, #tpu.memory_space<vmem>>, vector<1x1x8x128xf32>
    %7 = vector.shape_cast %6 : vector<1x1x8x128xf32> to vector<8x128xf32>
    %c1_13 = arith.constant 1 : index
    %c1_14 = arith.constant 1 : index
    %c0_15 = arith.constant 0 : index
    %c0_16 = arith.constant 0 : index
    %8 = vector.load %arg1[%c1_13, %c1_14, %c0_15, %c0_16] : memref<3x3x8x128xf32, #tpu.memory_space<vmem>>, vector<1x1x8x128xf32>
    %9 = vector.shape_cast %8 : vector<1x1x8x128xf32> to vector<8x128xf32>
    %c1_17 = arith.constant 1 : index
    %c2_18 = arith.constant 2 : index
    %c0_19 = arith.constant 0 : index
    %c0_20 = arith.constant 0 : index
    %10 = vector.load %arg1[%c1_17, %c2_18, %c0_19, %c0_20] : memref<3x3x8x128xf32, #tpu.memory_space<vmem>>, vector<1x1x8x128xf32>
    %11 = vector.shape_cast %10 : vector<1x1x8x128xf32> to vector<8x128xf32>
    %c2_21 = arith.constant 2 : index
    %c0_22 = arith.constant 0 : index
    %c0_23 = arith.constant 0 : index
    %c0_24 = arith.constant 0 : index
    %12 = vector.load %arg1[%c2_21, %c0_22, %c0_23, %c0_24] : memref<3x3x8x128xf32, #tpu.memory_space<vmem>>, vector<1x1x8x128xf32>
    %13 = vector.shape_cast %12 : vector<1x1x8x128xf32> to vector<8x128xf32>
    %c2_25 = arith.constant 2 : index
    %c1_26 = arith.constant 1 : index
    %c0_27 = arith.constant 0 : index
    %c0_28 = arith.constant 0 : index
    %14 = vector.load %arg1[%c2_25, %c1_26, %c0_27, %c0_28] : memref<3x3x8x128xf32, #tpu.memory_space<vmem>>, vector<1x1x8x128xf32>
    %15 = vector.shape_cast %14 : vector<1x1x8x128xf32> to vector<8x128xf32>
    %c2_29 = arith.constant 2 : index
    %c2_30 = arith.constant 2 : index
    %c0_31 = arith.constant 0 : index
    %c0_32 = arith.constant 0 : index
    %16 = vector.load %arg1[%c2_29, %c2_30, %c0_31, %c0_32] : memref<3x3x8x128xf32, #tpu.memory_space<vmem>>, vector<1x1x8x128xf32>
    %17 = vector.shape_cast %16 : vector<1x1x8x128xf32> to vector<8x128xf32>
    %18 = arith.subf %7, %13 : vector<8x128xf32>
    %19 = arith.subf %9, %15 : vector<8x128xf32>
    %20 = arith.subf %11, %17 : vector<8x128xf32>
    %21 = arith.subf %13, %1 : vector<8x128xf32>
    %22 = arith.subf %15, %3 : vector<8x128xf32>
    %23 = arith.subf %17, %5 : vector<8x128xf32>
    %24 = arith.subf %1, %7 : vector<8x128xf32>
    %25 = arith.subf %3, %9 : vector<8x128xf32>
    %26 = arith.subf %5, %11 : vector<8x128xf32>
    %27 = arith.mulf %18, %18 : vector<8x128xf32>
    %28 = arith.mulf %19, %19 : vector<8x128xf32>
    %29 = arith.addf %27, %28 : vector<8x128xf32>
    %30 = arith.mulf %20, %20 : vector<8x128xf32>
    %31 = arith.addf %29, %30 : vector<8x128xf32>
    %32 = arith.mulf %21, %21 : vector<8x128xf32>
    %33 = arith.mulf %22, %22 : vector<8x128xf32>
    %34 = arith.addf %32, %33 : vector<8x128xf32>
    %35 = arith.mulf %23, %23 : vector<8x128xf32>
    %36 = arith.addf %34, %35 : vector<8x128xf32>
    %37 = arith.mulf %24, %24 : vector<8x128xf32>
    %38 = arith.mulf %25, %25 : vector<8x128xf32>
    %39 = arith.addf %37, %38 : vector<8x128xf32>
    %40 = arith.mulf %26, %26 : vector<8x128xf32>
    %41 = arith.addf %39, %40 : vector<8x128xf32>
    %42 = arith.mulf %31, %36 : vector<8x128xf32>
    %43 = arith.mulf %36, %41 : vector<8x128xf32>
    %44 = arith.addf %42, %43 : vector<8x128xf32>
    %45 = arith.mulf %41, %31 : vector<8x128xf32>
    %46 = arith.addf %44, %45 : vector<8x128xf32>
    %cst = arith.constant 2.000000e+00 : f32
    %47 = vector.broadcast %cst : f32 to vector<8x128xf32>
    %48 = arith.mulf %47, %46 : vector<8x128xf32>
    %49 = arith.mulf %31, %31 : vector<8x128xf32>
    %50 = arith.mulf %36, %36 : vector<8x128xf32>
    %51 = arith.addf %49, %50 : vector<8x128xf32>
    %52 = arith.mulf %41, %41 : vector<8x128xf32>
    %53 = arith.addf %51, %52 : vector<8x128xf32>
    %54 = arith.subf %48, %53 : vector<8x128xf32>
    %cst_33 = arith.constant 0.000000e+00 : f32
    %55 = vector.broadcast %cst_33 : f32 to vector<8x128xf32>
    %56 = arith.maximumf %54, %55 : vector<8x128xf32>
    %57 = math.sqrt %56 : vector<8x128xf32>
    %cst_34 = arith.constant 5.000000e-01 : f32
    %58 = vector.broadcast %cst_34 : f32 to vector<8x128xf32>
    %59 = arith.mulf %58, %57 : vector<8x128xf32>
    %cst_35 = arith.constant 1.000000e-10 : f32
    %60 = vector.broadcast %cst_35 : f32 to vector<8x128xf32>
    %61 = arith.addf %59, %60 : vector<8x128xf32>
    %cst_36 = arith.constant 4.000000e+00 : f32
    %62 = vector.broadcast %cst_36 : f32 to vector<8x128xf32>
    %63 = arith.mulf %61, %62 : vector<8x128xf32>
    %64 = tpu.reciprocal %63 : vector<8x128xf32> -> vector<8x128xf32>
    %cst_37 = arith.constant 0.000000e+00 : f32
    %65 = vector.broadcast %cst_37 : f32 to vector<8x128xf32>
    %cst_38 = arith.constant 0.000000e+00 : f32
    %66 = vector.broadcast %cst_38 : f32 to vector<8x128xf32>
    %67 = arith.cmpf oeq, %59, %66 : vector<8x128xf32>
    %68 = arith.addf %36, %41 : vector<8x128xf32>
    %69 = arith.subf %68, %31 : vector<8x128xf32>
    %70 = arith.mulf %69, %64 : vector<8x128xf32>
    %71 = arith.select %67, %65, %70 : vector<8x128xi1>, vector<8x128xf32>
    %c0_39 = arith.constant 0 : index
    %c0_40 = arith.constant 0 : index
    %c0_41 = arith.constant 0 : index
    %72 = vector.load %arg2[%c0_39, %c0_40, %c0_41] : memref<3x8x128xf32, #tpu.memory_space<vmem>>, vector<1x8x128xf32>
    %73 = vector.shape_cast %72 : vector<1x8x128xf32> to vector<8x128xf32>
    %74 = vector.shape_cast %71 : vector<8x128xf32> to vector<1x8x128xf32>
    tpu.vector_store %arg2[%c0_39, %c0_40, %c0_41], %74 {strides = array<i32>} : memref<3x8x128xf32, #tpu.memory_space<vmem>>, vector<1x8x128xf32>,
    %75 = arith.addf %31, %41 : vector<8x128xf32>
    %76 = arith.subf %75, %36 : vector<8x128xf32>
    %77 = arith.mulf %76, %64 : vector<8x128xf32>
    %78 = arith.select %67, %65, %77 : vector<8x128xi1>, vector<8x128xf32>
    %c1_42 = arith.constant 1 : index
    %c0_43 = arith.constant 0 : index
    %c0_44 = arith.constant 0 : index
    %79 = vector.load %arg2[%c1_42, %c0_43, %c0_44] : memref<3x8x128xf32, #tpu.memory_space<vmem>>, vector<1x8x128xf32>
    %80 = vector.shape_cast %79 : vector<1x8x128xf32> to vector<8x128xf32>
    %81 = vector.shape_cast %78 : vector<8x128xf32> to vector<1x8x128xf32>
    tpu.vector_store %arg2[%c1_42, %c0_43, %c0_44], %81 {strides = array<i32>} : memref<3x8x128xf32, #tpu.memory_space<vmem>>, vector<1x8x128xf32>,
    %82 = arith.addf %31, %36 : vector<8x128xf32>
    %83 = arith.subf %82, %41 : vector<8x128xf32>
    %84 = arith.mulf %83, %64 : vector<8x128xf32>
    %85 = arith.select %67, %65, %84 : vector<8x128xi1>, vector<8x128xf32>
    %c2_45 = arith.constant 2 : index
    %c0_46 = arith.constant 0 : index
    %c0_47 = arith.constant 0 : index
    %86 = vector.load %arg2[%c2_45, %c0_46, %c0_47] : memref<3x8x128xf32, #tpu.memory_space<vmem>>, vector<1x8x128xf32>
    %87 = vector.shape_cast %86 : vector<1x8x128xf32> to vector<8x128xf32>
    %88 = vector.shape_cast %85 : vector<8x128xf32> to vector<1x8x128xf32>
    tpu.vector_store %arg2[%c2_45, %c0_46, %c0_47], %88 {strides = array<i32>} : memref<3x8x128xf32, #tpu.memory_space<vmem>>, vector<1x8x128xf32>,
    return
  }
  func.func @transform_0(%arg0: i32) -> (i32, i32, i32, i32) {
    %c0_i32 = arith.constant 0 : i32
    %c0_i32_0 = arith.constant 0 : i32
    %c0_i32_1 = arith.constant 0 : i32
    %c0_i32_2 = arith.constant 0 : i32
    return %c0_i32, %c0_i32_0, %arg0, %c0_i32_1 : i32, i32, i32, i32
  }
  func.func @transform_1(%arg0: i32) -> (i32, i32, i32) {
    %c0_i32 = arith.constant 0 : i32
    %c0_i32_0 = arith.constant 0 : i32
    %c0_i32_1 = arith.constant 0 : i32
    return %c0_i32, %arg0, %c0_i32_0 : i32, i32, i32
  }
}

</mosaic_0001>

<bundles_post_ra>
// kernel: tpu_custom_call.1
= control target key start
LH: loop header
LB: loop body
LE: loop exit
PB: predicated region body
PF: predicated region fallthrough
CT: control target
= control target key end

     0   :  { %6 = vsyncpa [#allocation3], 0  ;;  %s223_s0 = inlined_call_operand.hbm [shape: f32[3,3,8,128], index: 0, kind: input, shape index: {}]   ;;  %s224_s1 = inlined_call_operand.hbm [shape: f32[3,8,128], index: 1, kind: output, shape index: {}]  }
   0x1   :  { %7 = vsyncpa [#allocation4], 0  ;;  %s179_s6 = smov [#allocation2]   ;;  %s131_s10 = scalar_lea.hbm %s223_s0, 1152 }
   0x2   :  { %s13_s7 = sshll.u32 %s179_s6, 4  ;;  %p132_p0 = scmp.ne.s32.totalorder %s223_s0, %s131_s10  ;;  %s14_s7 = int_to_ptr.vmem [resolvable:$true] %s13_s7 }
   0x3   :  { %p135_p1 = scmp.lt.u32.totalorder %s131_s10, %s223_s0 }
   0x5   :  { %p137_p2 = pnand %p135_p1, %p132_p0 }
   0x7   :  { %140 = shalt.err (!%p137_p2)
}
   0x8   :  { %s141_s15 = scalar_lea.vmem %s14_s7, 1152  ;;  %p146_p4 = scmp.lt.s32.totalorder %s14_s7, %s14_s7 }
   0x9   :  { %p142_p3 = scmp.ne.s32.totalorder %s14_s7, %s141_s15  ;;  %p147_p5 = scmp.lt.s32.totalorder %s141_s15, %s141_s15 }
   0xb   :  { %p148_p6 = por %p147_p5, %p146_p4 }
   0xd   :  { %p149_p7 = pnand %p148_p6, %p142_p3 }
   0xf   :  { %152 = shalt.err (!%p149_p7)
}
  0x10   :  { %s180_s16 = smov 128   ;;  %s181_s17 = smov 8  }
  0x11   :  { %19 = dma.hbm_to_vmem [thread:$0]  %s223_s0, 1152, %s14_s7, [#allocation3], %s180_s16, %s180_s16, %s181_s17  }
  0x12   :  { %175 = dma.done.wait [#allocation3], 1152  }
  0x13   :  { %176 = vsyncadd [#allocation3], 4294966144  ;;  %v23_v0 = vld [vmem:[#allocation2] sm:$0xff]  ;;  %v25_v1 = vld [vmem:[#allocation2 + $0x8] sm:$0xff]  ;;  %s182_s0 = smov [#allocation5]  }
  0x14   :  { %v27_v2 = vld [vmem:[#allocation2 + $0x10] sm:$0xff]  ;;  %v29_v3 = vld [vmem:[#allocation2 + $0x18] sm:$0xff]  ;;  %v31_v4 = vld [vmem:[#allocation2 + $0x20] sm:$0xff]  ;;  %s111_s20 = sshll.u32 %s182_s0, 4  ;;  %s112_s20 = int_to_ptr.vmem [resolvable:$true] %s111_s20 }
  0x15   :  { %v33_v5 = vld [vmem:[#allocation2 + $0x28] sm:$0xff]  ;;  %v35_v6 = vld [vmem:[#allocation2 + $0x30] sm:$0xff]  ;;  %v37_v7 = vld [vmem:[#allocation2 + $0x38] sm:$0xff]  ;;  %v46_v9 = vsub.f32 %v23_v0, %v29_v3  ;;  %v47_v10 = vsub.f32 %v25_v1, %v31_v4  ;;  %s153_s21 = scalar_lea.vmem %s112_s20, 384  ;;  %p158_p9 = scmp.lt.s32.totalorder %s112_s20, %s112_s20 }
  0x16   :  { %v39_v8 = vld [vmem:[#allocation2 + $0x40] sm:$0xff]  ;;  %v48_v11 = vsub.f32 %v27_v2, %v33_v5  ;;  %v40_v12 = vsub.f32 %v29_v3, %v35_v6  ;;  %v41_v13 = vsub.f32 %v31_v4, %v37_v7  ;;  %v43_v15 = vsub.f32 %v35_v6, %v23_v0  ;;  %p154_p8 = scmp.ne.s32.totalorder %s112_s20, %s153_s21  ;;  %p159_p10 = scmp.lt.s32.totalorder %s153_s21, %s153_s21 }
  0x17   :  { %v42_v14 = vsub.f32 %v33_v5, %v39_v8  ;;  %v44_v16 = vsub.f32 %v37_v7, %v25_v1  ;;  %v45_v17 = vsub.f32 %v39_v8, %v27_v2  ;;  %v59_v18 = vmul.f32 %v46_v9, %v46_v9 }
  0x18   :  { %v60_v19 = vmul.f32 %v47_v10, %v47_v10  ;;  %v49_v20 = vmul.f32 %v40_v12, %v40_v12  ;;  %v50_v21 = vmul.f32 %v41_v13, %v41_v13  ;;  %v54_v23 = vmul.f32 %v43_v15, %v43_v15  ;;  %p160_p11 = por %p159_p10, %p158_p9 }
  0x19   :  { %v52_v22 = vmul.f32 %v42_v14, %v42_v14  ;;  %v55_v24 = vmul.f32 %v44_v16, %v44_v16  ;;  %v57_v25 = vmul.f32 %v45_v17, %v45_v17  ;;  %v62_v27 = vmul.f32 %v48_v11, %v48_v11 }
  0x1a   :  { %v61_v26 = vadd.f32 %v60_v19, %v59_v18  ;;  %v51_v28 = vadd.f32 %v50_v21, %v49_v20  ;;  %p161_p12 = pnand %p160_p11, %p154_p8 }
  0x1b   :  { %v56_v29 = vadd.f32 %v55_v24, %v54_v23 }
  0x1c   :  { %v63_v30 = vadd.f32 %v62_v27, %v61_v26  ;;  %v53_v31 = vadd.f32 %v52_v22, %v51_v28 }
  0x1d   :  { %v58_v32 = vadd.f32 %v57_v25, %v56_v29 }
  0x1e   :  { %v70_v33 = vmul.f32 %v53_v31, %v53_v31  ;;  %v73_v34 = vmul.f32 %v63_v30, %v63_v30  ;;  %v67_v37 = vmul.f32 %v63_v30, %v53_v31  ;;  %v94_v55 = vadd.f32 %v63_v30, %v53_v31 }
  0x1f   :  { %v64_v35 = vmul.f32 %v58_v32, %v53_v31  ;;  %v65_v36 = vmul.f32 %v63_v30, %v58_v32  ;;  %v71_v38 = vmul.f32 %v58_v32, %v58_v32  ;;  %v89_v54 = vadd.f32 %v63_v30, %v58_v32 }
  0x20   :  { %v100_v56 = vadd.f32 %v58_v32, %v53_v31  ;;  %v95_v58 = vsub.f32 %v94_v55, %v58_v32 }
  0x21   :  { %v66_v39 = vadd.f32 %v65_v36, %v64_v35  ;;  %v72_v40 = vadd.f32 %v71_v38, %v70_v33  ;;  %v90_v57 = vsub.f32 %v89_v54, %v53_v31 }
  0x22   :  { %v101_v59 = vsub.f32 %v100_v56, %v63_v30 }
  0x23   :  { %v68_v41 = vadd.f32 %v67_v37, %v66_v39  ;;  %v74_v42 = vadd.f32 %v73_v34, %v72_v40 }
  0x25   :  { %v69_v43 = vmul.f32 2.0, %v68_v41 }
  0x27   :  { %v75_v44 = vsub.f32 %v69_v43, %v74_v42 }
  0x29   :  { %v76_v45 = vmax.f32 %v75_v44, 0.0 }
  0x2b   :  { %127 = vrsqrt.f32 %v76_v45  ;;  %vm79_vm0 = vcmp.eq.f32.partialorder %v76_v45, inf  ;;  %v82_v47 = vand.u32 2147483648, %v76_v45  ;;  %vm81_vm1 = vcmp.eq.f32.partialorder %v76_v45, 0.0 }
  0x35   :  { %v128_v46 = vpop.eup %127 }
  0x36   :  { %v78_v48 = vmul.f32 %v128_v46, %v76_v45 }
  0x38   :  { %v80_v49 = vsel %vm79_vm0, %v76_v45, %v78_v48 }
  0x39   :  { %v83_v50 = vsel %vm81_vm1, %v82_v47, %v80_v49 }
  0x3a   :  { %v84_v51 = vmul.f32 0.5, %v83_v50 }
  0x3c   :  { %v85_v52 = vadd.f32 1e-10, %v84_v51  ;;  %vm88_vm2 = vcmp.eq.f32.partialorder %v84_v51, 0.0 }
  0x3e   :  { %v86_v53 = vmul.f32 4.0, %v85_v52 }
  0x40   :  { %129 = vrcp.f32 %v86_v53 }
  0x4a   :  { %v130_v60 = vpop.eup %129 }
  0x4b   :  { %v91_v61 = vmul.f32 %v130_v60, %v90_v57  ;;  %v96_v62 = vmul.f32 %v130_v60, %v95_v58  ;;  %v102_v63 = vmul.f32 %v130_v60, %v101_v59 }
  0x4d   :  { %v92_v0 = vsel %vm88_vm2, 0.0, %v91_v61  ;;  %v97_v1 = vsel %vm88_vm2, 0.0, %v96_v62  ;;  %v103_v2 = vsel %vm88_vm2, 0.0, %v102_v63 }
  0x4e   :  { %93 = vst [vmem:[#allocation5] sm:$0xff] %v92_v0  ;;  %99 = vst [vmem:[#allocation5 + $0x8] sm:$0xff] %v97_v1 }
  0x4f   :  { %105 = vst [vmem:[#allocation5 + $0x10] sm:$0xff] %v103_v2 }
  0x50   :  { %164 = shalt.err (!%p161_p12)
}
  0x51   :  { %s165_s24 = scalar_lea.hbm %s224_s1, 384 }
  0x52   :  { %p166_p13 = scmp.ne.s32.totalorder %s224_s1, %s165_s24  ;;  %p169_p0 = scmp.lt.u32.totalorder %s165_s24, %s224_s1 }
  0x54   :  { %p171_p1 = pnand %p169_p0, %p166_p13 }
  0x56   :  { %174 = shalt.err (!%p171_p1)
}
  0x57   :  { %117 = dma.vmem_to_hbm [thread:$0]  %s112_s20, 384, %s224_s1, [#allocation4], %s180_s16, %s180_s16, %s181_s17  }
  0x58   :  { %177 = dma.done.wait [#allocation4], 384  }
  0x59   :  { %178 = vsyncadd [#allocation4], 4294966912 }
  0x5a   :  { %121 = vsyncpa [#allocation3], 1 }
  0x5b   :  { %122 = vsyncpa [#allocation4], 1 }

</bundles_post_ra>
